<compile_context>
chip_gen: v7x
topology: tpu7x:2x2x1
jax: 0.10.0
libtpu: 0.0.40
codegen_flags: <defaults>
</compile_context>

<pallas_src>
import functools

import jax
import jax.numpy as jnp
from jax.experimental import pallas as pl
from jax.experimental.pallas import tpu as pltpu


def _round_up(a, b):
    return (a + b - 1) // b * b


def _stce_kernel(x_ref, t_ref, loss_ref, *, inv_temp_t, inv_temp_s):
    x = x_ref[...].astype(jnp.float32)
    t = t_ref[...].astype(jnp.float32)

    # Trace-time skip of the temperature scaling in the (default) temp==1 case.
    if inv_temp_s != 1.0:
        x = x * inv_temp_s
    if inv_temp_t != 1.0:
        t = t * inv_temp_t

    # Stable log-sum-exp of x.
    x_max = jnp.max(x, axis=-1, keepdims=True)                           # (tm, 1)
    x_shift = x - x_max                                                  # (tm, C)
    lse = jnp.log(jnp.sum(jnp.exp(x_shift), axis=-1, keepdims=True))     # (tm, 1)

    # Unnormalized, max-shifted softmax of the target.
    t_exp = jnp.exp(t - jnp.max(t, axis=-1, keepdims=True))              # (tm, C)
    t_den = jnp.sum(t_exp, axis=-1, keepdims=True)                       # (tm, 1)

    # loss = sum(-softmax(t) * (x_shift - lse))
    #      = lse - sum(t_exp * x_shift) / sum(t_exp)   (softmax(t) sums to 1)
    num = jnp.sum(t_exp * x_shift, axis=-1, keepdims=True)               # (tm, 1)
    # Exact reciprocal on a (tm, 1) vector: negligible cost, keeps 1e-5 accuracy
    # (approx=True EUP reciprocal is only ~1e-4 relative).
    loss_ref[...] = lse - num * pl.reciprocal(t_den, approx=False)


def soft_target_cross_entropy_v2(x, target, temp_t=1.0, temp_s=1.0, mean=True):
    """Pallas TPU implementation of SoftTargetCrossEntropy_v2.forward."""
    assert x.shape == target.shape and x.ndim == 2
    N, C = x.shape
    itemsize = max(x.dtype.itemsize, target.dtype.itemsize)

    # Row tile: as large as possible to amortize the ~0.35 us/step pipeline
    # overhead, capped so (2 inputs x 2 pipeline buffers x tm x C) stays well
    # inside VMEM on every generation (v7x has only 64 MiB physical per TC).
    vmem_budget = 24 * 1024 * 1024                       # for the input buffers
    tm_cap = max(8, (vmem_budget // (4 * C * itemsize)) // 8 * 8)
    tm = int(min(1024, tm_cap, _round_up(N, 8)))

    n_pad = _round_up(N, tm)
    if n_pad != N:
        # Zero rows yield a finite (log C) loss; they are sliced off below.
        pad = ((0, n_pad - N), (0, 0))
        x = jnp.pad(x, pad)
        target = jnp.pad(target, pad)
    grid = n_pad // tm

    kernel = functools.partial(
        _stce_kernel,
        inv_temp_t=1.0 / float(temp_t),
        inv_temp_s=1.0 / float(temp_s),
    )

    # 2 inputs x 2 pipeline buffers + small output buffers + slack.
    needed_vmem = 4 * tm * C * itemsize + 4 * tm * 4 + (1 << 20)
    vmem_limit = int(min(48 << 20, max(needed_vmem, 16 << 20)))

    loss = pl.pallas_call(
        kernel,
        out_shape=jax.ShapeDtypeStruct((n_pad, 1), jnp.float32),
        grid_spec=pltpu.PrefetchScalarGridSpec(
            num_scalar_prefetch=0,
            grid=(grid,),
            in_specs=[
                pl.BlockSpec((tm, C), lambda i: (i, 0)),
                pl.BlockSpec((tm, C), lambda i: (i, 0)),
            ],
            out_specs=pl.BlockSpec((tm, 1), lambda i: (i, 0)),
        ),
        compiler_params=pltpu.CompilerParams(
            # No cross-step accumulation -> grid axis can be sharded across
            # TensorCores (v7x megacore); neutral on v5e/v6e.
            dimension_semantics=("parallel",),
            vmem_limit_bytes=vmem_limit,
        ),
    )(x, target)

    loss = loss[:N, 0]
    if mean:
        return jnp.mean(loss)
    return loss


def _reference(x, target, temp_t=1.0, temp_s=1.0, mean=True):
    loss = jnp.sum(
        -jax.nn.softmax(target / temp_t, axis=-1)
        * jax.nn.log_softmax(x / temp_s, axis=-1),
        axis=-1,
    )
    return loss.mean() if mean else loss


if __name__ == "__main__":
    key = jax.random.PRNGKey(0)

    cases = [
        # (N, C, temp_t, temp_s)
        (16, 128, 1.0, 1.0),   # module __init__ defaults
        (20, 128, 2.0, 0.5),   # non-divisible N (exercises padding) + temps
    ]
    for idx, (N, C, temp_t, temp_s) in enumerate(cases):
        kx, kt = jax.random.split(jax.random.fold_in(key, idx))
        x = jax.random.normal(kx, (N, C), dtype=jnp.float32)
        target = jax.random.normal(kt, (N, C), dtype=jnp.float32)

        out_mean = soft_target_cross_entropy_v2(x, target, temp_t, temp_s, mean=True)
        out_vec = soft_target_cross_entropy_v2(x, target, temp_t, temp_s, mean=False)
        jax.block_until_ready(out_mean)
        jax.block_until_ready(out_vec)

        ref_mean = _reference(x, target, temp_t, temp_s, mean=True)
        ref_vec = _reference(x, target, temp_t, temp_s, mean=False)

        assert out_vec.shape == (N,)
        assert jnp.allclose(out_mean, ref_mean, atol=1e-5, rtol=1e-5)
        assert jnp.allclose(out_vec, ref_vec, atol=1e-5, rtol=1e-5)

    print("KERNEL_OK")
</pallas_src>

<mosaic_0001>
module attributes {stable_mosaic.version = 11 : i64} {
  func.func @_stce_kernel(%arg0: i32, %arg1: memref<16x128xf32, #tpu.memory_space<vmem>>, %arg2: memref<16x128xf32, #tpu.memory_space<vmem>>, %arg3: memref<16x1xf32, #tpu.memory_space<vmem>>) attributes {dimension_semantics = [#tpu.dimension_semantics<parallel>], iteration_bounds = array<i64: 1>, scalar_prefetch = 0 : i64, scratch_operands = 0 : i64, tpu.core_type = #tpu.core_type<tc>, window_params = [{transform_indices = @transform_0, window_bounds = array<i64: 16, 128>}, {transform_indices = @transform_1, window_bounds = array<i64: 16, 128>}, {transform_indices = @transform_2, window_bounds = array<i64: 16, 1>}]} {
    %c0 = arith.constant 0 : index
    %c0_0 = arith.constant 0 : index
    %0 = vector.load %arg1[%c0, %c0_0] : memref<16x128xf32, #tpu.memory_space<vmem>>, vector<16x128xf32>
    %c0_1 = arith.constant 0 : index
    %c0_2 = arith.constant 0 : index
    %1 = vector.load %arg2[%c0_1, %c0_2] : memref<16x128xf32, #tpu.memory_space<vmem>>, vector<16x128xf32>
    %cst = arith.constant dense<0xFF800000> : vector<16xf32>
    %2 = vector.multi_reduction <maximumf>, %0, %cst [1] : vector<16x128xf32> to vector<16xf32>
    %3 = vector.shape_cast %2 : vector<16xf32> to vector<16x1xf32>
    %4 = vector.broadcast %3 : vector<16x1xf32> to vector<16x128xf32>
    %5 = arith.subf %0, %4 : vector<16x128xf32>
    %6 = math.exp %5 : vector<16x128xf32>
    %cst_3 = arith.constant dense<0.000000e+00> : vector<16xf32>
    %7 = vector.multi_reduction <add>, %6, %cst_3 [1] : vector<16x128xf32> to vector<16xf32>
    %8 = vector.shape_cast %7 : vector<16xf32> to vector<16x1xf32>
    %9 = math.log %8 : vector<16x1xf32>
    %cst_4 = arith.constant dense<0xFF800000> : vector<16xf32>
    %10 = vector.multi_reduction <maximumf>, %1, %cst_4 [1] : vector<16x128xf32> to vector<16xf32>
    %11 = vector.shape_cast %10 : vector<16xf32> to vector<16x1xf32>
    %12 = vector.broadcast %11 : vector<16x1xf32> to vector<16x128xf32>
    %13 = arith.subf %1, %12 : vector<16x128xf32>
    %14 = math.exp %13 : vector<16x128xf32>
    %cst_5 = arith.constant dense<0.000000e+00> : vector<16xf32>
    %15 = vector.multi_reduction <add>, %14, %cst_5 [1] : vector<16x128xf32> to vector<16xf32>
    %16 = vector.shape_cast %15 : vector<16xf32> to vector<16x1xf32>
    %17 = arith.mulf %14, %5 : vector<16x128xf32>
    %cst_6 = arith.constant dense<0.000000e+00> : vector<16xf32>
    %18 = vector.multi_reduction <add>, %17, %cst_6 [1] : vector<16x128xf32> to vector<16xf32>
    %19 = vector.shape_cast %18 : vector<16xf32> to vector<16x1xf32>
    %20 = tpu.reciprocal %16 : vector<16x1xf32> -> vector<16x1xf32>
    %21 = arith.mulf %19, %20 : vector<16x1xf32>
    %22 = arith.subf %9, %21 : vector<16x1xf32>
    %c0_7 = arith.constant 0 : index
    %c0_8 = arith.constant 0 : index
    %23 = vector.load %arg3[%c0_7, %c0_8] : memref<16x1xf32, #tpu.memory_space<vmem>>, vector<16x1xf32>
    tpu.vector_store %arg3[%c0_7, %c0_8], %22 {strides = array<i32>} : memref<16x1xf32, #tpu.memory_space<vmem>>, vector<16x1xf32>,
    return
  }
  func.func @transform_0(%arg0: i32) -> (i32, i32) {
    %c0_i32 = arith.constant 0 : i32
    %c0_i32_0 = arith.constant 0 : i32
    return %arg0, %c0_i32 : i32, i32
  }
  func.func @transform_1(%arg0: i32) -> (i32, i32) {
    %c0_i32 = arith.constant 0 : i32
    %c0_i32_0 = arith.constant 0 : i32
    return %arg0, %c0_i32 : i32, i32
  }
  func.func @transform_2(%arg0: i32) -> (i32, i32) {
    %c0_i32 = arith.constant 0 : i32
    %c0_i32_0 = arith.constant 0 : i32
    return %arg0, %c0_i32 : i32, i32
  }
}

</mosaic_0001>

<bundles_post_ra>
// kernel: tpu_custom_call.1
= control target key start
LH: loop header
LB: loop body
LE: loop exit
PB: predicated region body
PF: predicated region fallthrough
CT: control target
= control target key end

     0   :  { %7 = vsyncpa [#allocation3], 0  ;;  %s213_s0 = inlined_call_operand.hbm [shape: f32[16,128], index: 0, kind: input, shape index: {}]   ;;  %s214_s1 = inlined_call_operand.hbm [shape: f32[16,128], index: 1, kind: input, shape index: {}]   ;;  %s215_s2 = inlined_call_operand.vmem [shape: f32[16,1], index: 2, kind: output, shape index: {}]  }
   0x1   :  { %8 = vsyncpa [#allocation5], 0  ;;  %s164_s9 = smov [#allocation2]   ;;  %s116_s13 = scalar_lea.hbm %s213_s0, 256 }
   0x2   :  { %s14_s10 = sshll.u32 %s164_s9, 4  ;;  %p117_p0 = scmp.ne.s32.totalorder %s213_s0, %s116_s13  ;;  %s15_s10 = int_to_ptr.vmem [resolvable:$true] %s14_s10 }
   0x3   :  { %p120_p1 = scmp.lt.u32.totalorder %s116_s13, %s213_s0 }
   0x5   :  { %p122_p2 = pnand %p120_p1, %p117_p0 }
   0x7   :  { %125 = shalt.err (!%p122_p2)
}
   0x8   :  { %s126_s18 = scalar_lea.vmem %s15_s10, 256  ;;  %p131_p4 = scmp.lt.s32.totalorder %s15_s10, %s15_s10 }
   0x9   :  { %p127_p3 = scmp.ne.s32.totalorder %s15_s10, %s126_s18  ;;  %p132_p5 = scmp.lt.s32.totalorder %s126_s18, %s126_s18 }
   0xb   :  { %p133_p6 = por %p132_p5, %p131_p4 }
   0xd   :  { %p134_p7 = pnand %p133_p6, %p127_p3 }
   0xf   :  { %137 = shalt.err (!%p134_p7)
}
  0x10   :  { %s165_s19 = smov 128   ;;  %s166_s20 = smov 8  }
  0x11   :  { %20 = dma.hbm_to_vmem [thread:$0]  %s213_s0, 256, %s15_s10, [#allocation3], %s165_s19, %s165_s19, %s166_s20  }
  0x12   :  { %s167_s23 = smov [#allocation4]   ;;  %s138_s27 = scalar_lea.hbm %s214_s1, 256 }
  0x13   :  { %s26_s24 = sshll.u32 %s167_s23, 4  ;;  %p139_p8 = scmp.ne.s32.totalorder %s214_s1, %s138_s27  ;;  %s27_s24 = int_to_ptr.vmem [resolvable:$true] %s26_s24 }
  0x14   :  { %p142_p9 = scmp.lt.u32.totalorder %s138_s27, %s214_s1 }
  0x16   :  { %p144_p10 = pnand %p142_p9, %p139_p8 }
  0x18   :  { %147 = shalt.err (!%p144_p10)
}
  0x19   :  { %s148_s4 = scalar_lea.vmem %s27_s24, 256  ;;  %p153_p12 = scmp.lt.s32.totalorder %s27_s24, %s27_s24 }
  0x1a   :  { %p149_p11 = scmp.ne.s32.totalorder %s27_s24, %s148_s4  ;;  %p154_p13 = scmp.lt.s32.totalorder %s148_s4, %s148_s4 }
  0x1c   :  { %p155_p0 = por %p154_p13, %p153_p12 }
  0x1e   :  { %p156_p1 = pnand %p155_p0, %p149_p11 }
  0x20   :  { %159 = shalt.err (!%p156_p1)
}
  0x21   :  { %32 = dma.hbm_to_vmem [thread:$0]  %s214_s1, 256, %s27_s24, [#allocation5], %s165_s19, %s165_s19, %s166_s20  }
  0x22   :  { %160 = dma.done.wait [#allocation3], 256  }
  0x23   :  { %161 = vsyncadd [#allocation3], 4294967040 }
  0x24   :  { %162 = dma.done.wait [#allocation5], 256  }
  0x25   :  { %163 = vsyncadd [#allocation5], 4294967040  ;;  %v41_v0 = vld [vmem:[#allocation4] sm:$0xff]  ;;  %v39_v1 = vld [vmem:[#allocation2] sm:$0xff]  ;;  %vm87_vm0 = vcmask 7168  }
  0x26   :  { %61 = vmax.xlane.f32.xlu1 %v41_v0  ;;  %43 = vmax.xlane.f32.xlu0 %v39_v1  ;;  %v42_v2 = vld [vmem:[#allocation4 + $0x8] sm:$0xff]  ;;  %v40_v3 = vld [vmem:[#allocation2 + $0x8] sm:$0xff] }
  0x2a   :  { %63 = vmax.xlane.f32.xlu1 %v42_v2  ;;  %45 = vmax.xlane.f32.xlu0 %v40_v3 }
  0xb3   :  { %v62_v4 = vpop.xlane.xlu1 %61  ;;  %v44_v5 = vpop.xlane.xlu0 %43 }
  0xb4   :  { %v65_v6 = vsub.f32 %v41_v0, %v62_v4  ;;  %v47_v7 = vsub.f32 %v39_v1, %v44_v5 }
  0xb6   :  { %v49_v8 = vmul.f32 1.442695, %v47_v7  ;;  %v67_v11 = vmul.f32 1.442695, %v65_v6 }
  0xb7   :  { %v64_v9 = vpop.xlane.xlu1 %63  ;;  %v46_v10 = vpop.xlane.xlu0 %45 }
  0xb8   :  { %v48_v12 = vsub.f32 %v40_v3, %v46_v10  ;;  %100 = vpow2.f32 %v49_v8  ;;  %v66_v13 = vsub.f32 %v42_v2, %v64_v9 }
  0xb9   :  { %102 = vpow2.f32 %v67_v11 }
  0xba   :  { %v51_v14 = vmul.f32 1.442695, %v48_v12  ;;  %v69_v15 = vmul.f32 1.442695, %v66_v13 }
  0xbc   :  { %104 = vpow2.f32 %v51_v14 }
  0xbd   :  { %106 = vpow2.f32 %v69_v15 }
  0xc2   :  { %v101_v16 = vpop.eup %100 }
  0xc3   :  { %53 = vadd.xlane.f32.xlu0 %v101_v16  ;;  %v103_v17 = vpop.eup %102 }
  0xc4   :  { %v75_v19 = vmul.f32 %v103_v17, %v47_v7 }
  0xc6   :  { %v105_v18 = vpop.eup %104 }
  0xc7   :  { %71 = vadd.xlane.f32.xlu0 %v103_v17  ;;  %55 = vadd.xlane.f32.xlu1 %v105_v18  ;;  %v107_v20 = vpop.eup %106 }
  0xc8   :  { %v76_v21 = vmul.f32 %v107_v20, %v48_v12 }
  0xcb   :  { %77 = vadd.xlane.f32.xlu0 %v75_v19  ;;  %73 = vadd.xlane.f32.xlu1 %v107_v20 }
  0xcf   :  { %79 = vadd.xlane.f32.xlu1 %v76_v21 }
 0x150   :  { %v54_v22 = vpop.xlane.xlu0 %53 }
 0x151   :  { %108 = vlog2.f32 %v54_v22 }
 0x154   :  { %v56_v23 = vpop.xlane.xlu1 %55  ;;  %v72_v24 = vpop.xlane.xlu0 %71 }
 0x155   :  { %110 = vrcp.f32 %v72_v24 }
 0x156   :  { %112 = vlog2.f32 %v56_v23 }
 0x158   :  { %v74_v25 = vpop.xlane.xlu1 %73  ;;  %v78_v28 = vpop.xlane.xlu0 %77 }
 0x159   :  { %114 = vrcp.f32 %v74_v25 }
 0x15b   :  { %v109_v26 = vpop.eup %108 }
 0x15c   :  { %v58_v30 = vmul.f32 0.6931472, %v109_v26  ;;  %v80_v34 = vpop.xlane.xlu1 %79 }
 0x15f   :  { %v111_v27 = vpop.eup %110 }
 0x160   :  { %v113_v29 = vpop.eup %112  ;;  %v83_v31 = vmul.f32 %v111_v27, %v78_v28 }
 0x161   :  { %v60_v35 = vmul.f32 0.6931472, %v113_v29 }
 0x162   :  { %v85_v33 = vsub.f32 %v58_v30, %v83_v31 }
 0x163   :  { %v115_v32 = vpop.eup %114 }
 0x164   :  { %v84_v36 = vmul.f32 %v115_v32, %v80_v34  ;;  %88 = vst.msk [vmem:[%s215_s2] sm:$0xff] %vm87_vm0, %v85_v33 }
 0x166   :  { %v86_v37 = vsub.f32 %v60_v35, %v84_v36 }
 0x168   :  { %89 = vst.msk [vmem:[%s215_s2 + $0x8] sm:$0xff] %vm87_vm0, %v86_v37 }
 0x169   :  { %94 = vsyncpa [#allocation3], 1 }
 0x16a   :  { %95 = vsyncpa [#allocation5], 1 }

</bundles_post_ra>
